<compile_context>
chip_gen: v5e
topology: v5e:2x2
jax: 0.10.0
libtpu: 0.0.40
codegen_flags: <defaults>
</compile_context>

<pallas_src>
import jax
import jax.numpy as jnp
from jax.experimental import pallas as pl
from jax.experimental.pallas import tpu as pltpu

HIDDEN = 128
LANE = 128
MAX_TILE_B = 2048        # per-step batch tile cap (keeps v5e scoped VMEM comfortable)
MIN_SPLIT_ROWS = 1024    # don't split a batch smaller than 2*this across grid steps


def _round_up(x, m):
    return ((x + m - 1) // m) * m


def _cdiv(a, b):
    return (a + b - 1) // b


def _pick_tile_b(batch):
    """Pick the batch tile: single tile for small batches (overhead-dominated
    anyway), otherwise an even number of near-equal tiles (<= MAX_TILE_B rows)
    to balance v7x's two TensorCores and minimize row-padding waste."""
    b8 = _round_up(max(batch, 8), 8)
    if b8 <= 2 * MIN_SPLIT_ROWS:
        return b8
    num_tiles = max(2, _cdiv(b8, MAX_TILE_B))
    if num_tiles % 2:
        num_tiles += 1
    return _round_up(_cdiv(b8, num_tiles), 8)


def _agent_mlp_kernel(x_ref,
                      w1_ref, b1_ref,
                      w2_ref, b2_ref,
                      w3_ref, b3_ref,
                      w4_ref, b4_ref,
                      o_ref):
    # x / weights are bf16; accumulate in f32, bias-add + relu in f32.
    x = x_ref[...]

    # Layer 1: Linear -> clamp(min=0) -> relu  (== single relu)
    h = jnp.dot(x, w1_ref[...], preferred_element_type=jnp.float32) + b1_ref[...]
    h = jnp.maximum(h, 0.0).astype(jnp.bfloat16)

    # Layer 2
    h = jnp.dot(h, w2_ref[...], preferred_element_type=jnp.float32) + b2_ref[...]
    h = jnp.maximum(h, 0.0).astype(jnp.bfloat16)

    # Layer 3
    h = jnp.dot(h, w3_ref[...], preferred_element_type=jnp.float32) + b3_ref[...]
    h = jnp.maximum(h, 0.0).astype(jnp.bfloat16)

    # Output layer (no activation). Output block is 128-lane dense, f32.
    q = jnp.dot(h, w4_ref[...], preferred_element_type=jnp.float32) + b4_ref[...]
    o_ref[...] = q.astype(o_ref.dtype)


def prepare_params(params):
    """One-time (per parameter update) preparation: bf16 weights, lane-dense
    padded output layer, biases kept in f32. Keeps padding/casts off the
    per-forward hot path."""
    num_inputs = params["w1"].shape[0]
    num_outputs = params["w4"].shape[1]
    out_pad = _round_up(num_outputs, LANE)

    w4 = jnp.zeros((HIDDEN, out_pad), jnp.bfloat16)
    w4 = w4.at[:, :num_outputs].set(params["w4"].astype(jnp.bfloat16))
    b4 = jnp.zeros((1, out_pad), jnp.float32).at[:, :num_outputs].set(params["b4"])

    return {
        "w1": params["w1"].astype(jnp.bfloat16), "b1": params["b1"].astype(jnp.float32),
        "w2": params["w2"].astype(jnp.bfloat16), "b2": params["b2"].astype(jnp.float32),
        "w3": params["w3"].astype(jnp.bfloat16), "b3": params["b3"].astype(jnp.float32),
        "w4": w4, "b4": b4,
        "num_inputs": int(num_inputs),
        "num_outputs": int(num_outputs),
        "out_pad": int(out_pad),
    }


def agent_forward(x, prepared):
    """x: [B, num_inputs] float32. prepared: output of prepare_params."""
    B, num_inputs = x.shape
    assert num_inputs == prepared["num_inputs"]
    num_outputs = prepared["num_outputs"]
    out_pad = prepared["out_pad"]

    tile_b = _pick_tile_b(B)
    b_pad = _round_up(B, tile_b)
    grid = (b_pad // tile_b,)

    # Cast the input stream to bf16 (halves x DMA bytes); pad rows only if the
    # batch is ragged w.r.t. the tile. Padded rows are sliced off below.
    if b_pad == B:
        xp = x.astype(jnp.bfloat16)
    else:
        xp = jnp.zeros((b_pad, num_inputs), jnp.bfloat16)
        xp = xp.at[:B, :].set(x.astype(jnp.bfloat16))

    x_spec = pl.BlockSpec((tile_b, num_inputs), lambda i: (i, 0))
    out_spec = pl.BlockSpec((tile_b, out_pad), lambda i: (i, 0))

    def resident(shape):
        # Constant index_map -> weights/biases are DMA'd once, stay in VMEM.
        return pl.BlockSpec(shape, lambda i: (0, 0))

    # Cost + VMEM sizing.
    flops = 2 * b_pad * (num_inputs * HIDDEN + 2 * HIDDEN * HIDDEN + HIDDEN * out_pad)
    weight_bytes = 2 * (num_inputs * HIDDEN + 2 * HIDDEN * HIDDEN + HIDDEN * out_pad) \
        + 4 * (3 * HIDDEN + out_pad)
    bytes_accessed = 2 * b_pad * num_inputs + 4 * b_pad * out_pad + weight_bytes

    vmem_bytes = (weight_bytes
                  + 2 * tile_b * num_inputs * 2   # double-buffered bf16 x tile
                  + 2 * tile_b * out_pad * 4      # double-buffered f32 out tile
                  + 8 * tile_b * HIDDEN * 4)      # activation scratch headroom
    vmem_limit = min(max(2 * vmem_bytes, 32 << 20), 64 << 20)

    q_pad = pl.pallas_call(
        _agent_mlp_kernel,
        out_shape=jax.ShapeDtypeStruct((b_pad, out_pad), jnp.float32),
        grid=grid,
        in_specs=[
            x_spec,
            resident((num_inputs, HIDDEN)), resident((1, HIDDEN)),
            resident((HIDDEN, HIDDEN)), resident((1, HIDDEN)),
            resident((HIDDEN, HIDDEN)), resident((1, HIDDEN)),
            resident((HIDDEN, out_pad)), resident((1, out_pad)),
        ],
        out_specs=out_spec,
        compiler_params=pltpu.CompilerParams(
            dimension_semantics=("parallel",),
            vmem_limit_bytes=vmem_limit),
        cost_estimate=pl.CostEstimate(
            flops=flops, transcendentals=0, bytes_accessed=bytes_accessed),
    )(xp,
      prepared["w1"], prepared["b1"],
      prepared["w2"], prepared["b2"],
      prepared["w3"], prepared["b3"],
      prepared["w4"], prepared["b4"])

    # Slice away batch-row and output-lane padding.
    return q_pad[:B, :num_outputs]


def init_params(key, num_inputs, num_outputs):
    """Deterministic init mirroring nn.Linear's U(-1/sqrt(fan_in), 1/sqrt(fan_in))."""
    def linear_init(k, fan_in, fan_out):
        kw, kb = jax.random.split(k)
        bound = 1.0 / jnp.sqrt(fan_in)
        # store weight as [in, out] so the kernel computes x @ W + b
        w = jax.random.uniform(kw, (fan_in, fan_out), jnp.float32, -bound, bound)
        b = jax.random.uniform(kb, (1, fan_out), jnp.float32, -bound, bound)
        return w, b

    k1, k2, k3, k4 = jax.random.split(key, 4)
    w1, b1 = linear_init(k1, num_inputs, HIDDEN)
    w2, b2 = linear_init(k2, HIDDEN, HIDDEN)
    w3, b3 = linear_init(k3, HIDDEN, HIDDEN)
    w4, b4 = linear_init(k4, HIDDEN, num_outputs)
    return {"w1": w1, "b1": b1, "w2": w2, "b2": b2,
            "w3": w3, "b3": b3, "w4": w4, "b4": b4}


def reference_forward(x, params):
    """Pure-JAX f32 reference of the PyTorch forward."""
    h = jnp.maximum(x @ params["w1"] + params["b1"], 0.0)
    h = jnp.maximum(h @ params["w2"] + params["b2"], 0.0)
    h = jnp.maximum(h @ params["w3"] + params["b3"], 0.0)
    return h @ params["w4"] + params["b4"]


def reference_forward_bf16(x, params):
    """Pure-JAX reference with the same bf16-matmul / f32-accumulate recipe."""
    def lin(a, w, b):
        return jnp.dot(a.astype(jnp.bfloat16), w.astype(jnp.bfloat16),
                       preferred_element_type=jnp.float32) + b
    h = jnp.maximum(lin(x, params["w1"], params["b1"]), 0.0)
    h = jnp.maximum(lin(h, params["w2"], params["b2"]), 0.0)
    h = jnp.maximum(lin(h, params["w3"], params["b3"]), 0.0)
    return lin(h, params["w4"], params["b4"])


if __name__ == "__main__":
    key = jax.random.PRNGKey(0)
    k_params, k_x = jax.random.split(key)

    batch = 8
    num_inputs = 32
    num_outputs = 16

    params = init_params(k_params, num_inputs, num_outputs)
    prepared = prepare_params(params)
    x = jax.random.normal(k_x, (batch, num_inputs), jnp.float32)

    q_pred = agent_forward(x, prepared)
    jax.block_until_ready(q_pred)
    assert q_pred.shape == (batch, num_outputs)

    # Tight check against a matching bf16/f32-acc reference, loose check
    # against the pure-f32 reference (bf16 matmuls are a perf choice).
    q_ref_bf16 = reference_forward_bf16(x, params)
    q_ref_f32 = reference_forward(x, params)
    assert jnp.allclose(q_pred, q_ref_bf16, atol=1e-3, rtol=1e-3)
    assert jnp.allclose(q_pred, q_ref_f32, atol=1e-1, rtol=1e-1)

    # Multi-tile, ragged-batch case: exercises the grid / row-padding path.
    k_x2 = jax.random.fold_in(k_x, 1)
    x_big = jax.random.normal(k_x2, (4100, num_inputs), jnp.float32)
    q_big = agent_forward(x_big, prepared)
    jax.block_until_ready(q_big)
    assert q_big.shape == (4100, num_outputs)
    assert jnp.allclose(q_big, reference_forward_bf16(x_big, params), atol=1e-3, rtol=1e-3)
    assert jnp.allclose(q_big, reference_forward(x_big, params), atol=1e-1, rtol=1e-1)

    print("KERNEL_OK")
</pallas_src>

<mosaic_0001>
module attributes {stable_mosaic.version = 11 : i64} {
  func.func @_agent_mlp_kernel(%arg0: i32, %arg1: memref<8x32xbf16, #tpu.memory_space<vmem>>, %arg2: memref<32x128xbf16, #tpu.memory_space<vmem>>, %arg3: memref<1x128xf32, #tpu.memory_space<vmem>>, %arg4: memref<128x128xbf16, #tpu.memory_space<vmem>>, %arg5: memref<1x128xf32, #tpu.memory_space<vmem>>, %arg6: memref<128x128xbf16, #tpu.memory_space<vmem>>, %arg7: memref<1x128xf32, #tpu.memory_space<vmem>>, %arg8: memref<128x128xbf16, #tpu.memory_space<vmem>>, %arg9: memref<1x128xf32, #tpu.memory_space<vmem>>, %arg10: memref<8x128xf32, #tpu.memory_space<vmem>>) attributes {dimension_semantics = [#tpu.dimension_semantics<parallel>], iteration_bounds = array<i64: 1>, scalar_prefetch = 0 : i64, scratch_operands = 0 : i64, tpu.core_type = #tpu.core_type<tc>, window_params = [{transform_indices = @transform_0, window_bounds = array<i64: 8, 32>}, {pipeline_mode = #tpu.pipeline_mode<synchronous>, transform_indices = @transform_1, window_bounds = array<i64: 32, 128>}, {pipeline_mode = #tpu.pipeline_mode<synchronous>, transform_indices = @transform_2, window_bounds = array<i64: 1, 128>}, {pipeline_mode = #tpu.pipeline_mode<synchronous>, transform_indices = @transform_3, window_bounds = array<i64: 128, 128>}, {pipeline_mode = #tpu.pipeline_mode<synchronous>, transform_indices = @transform_4, window_bounds = array<i64: 1, 128>}, {pipeline_mode = #tpu.pipeline_mode<synchronous>, transform_indices = @transform_5, window_bounds = array<i64: 128, 128>}, {pipeline_mode = #tpu.pipeline_mode<synchronous>, transform_indices = @transform_6, window_bounds = array<i64: 1, 128>}, {pipeline_mode = #tpu.pipeline_mode<synchronous>, transform_indices = @transform_7, window_bounds = array<i64: 128, 128>}, {pipeline_mode = #tpu.pipeline_mode<synchronous>, transform_indices = @transform_8, window_bounds = array<i64: 1, 128>}, {transform_indices = @transform_9, window_bounds = array<i64: 8, 128>}]} {
    %c0 = arith.constant 0 : index
    %c0_0 = arith.constant 0 : index
    %0 = vector.load %arg1[%c0, %c0_0] : memref<8x32xbf16, #tpu.memory_space<vmem>>, vector<8x32xbf16>
    %c0_1 = arith.constant 0 : index
    %c0_2 = arith.constant 0 : index
    %1 = vector.load %arg2[%c0_1, %c0_2] : memref<32x128xbf16, #tpu.memory_space<vmem>>, vector<32x128xbf16>
    %cst = arith.constant dense<0.000000e+00> : vector<8x128xf32>
    %2 = tpu.matmul %0, %1, %cst {dimension_numbers = #tpu.dot_dimension_numbers<[1], [0], [0], [1], [0, 0, 1, 1], [], []>} : vector<8x32xbf16>, vector<32x128xbf16>, vector<8x128xf32> -> vector<8x128xf32>
    %c0_3 = arith.constant 0 : index
    %c0_4 = arith.constant 0 : index
    %3 = vector.load %arg3[%c0_3, %c0_4] : memref<1x128xf32, #tpu.memory_space<vmem>>, vector<1x128xf32>
    %4 = vector.broadcast %3 : vector<1x128xf32> to vector<8x128xf32>
    %5 = arith.addf %2, %4 : vector<8x128xf32>
    %cst_5 = arith.constant 0.000000e+00 : f32
    %6 = vector.broadcast %cst_5 : f32 to vector<8x128xf32>
    %7 = arith.maximumf %5, %6 : vector<8x128xf32>
    %8 = arith.truncf %7 : vector<8x128xf32> to vector<8x128xbf16>
    %c0_6 = arith.constant 0 : index
    %c0_7 = arith.constant 0 : index
    %9 = vector.load %arg4[%c0_6, %c0_7] : memref<128x128xbf16, #tpu.memory_space<vmem>>, vector<128x128xbf16>
    %cst_8 = arith.constant dense<0.000000e+00> : vector<8x128xf32>
    %10 = tpu.matmul %8, %9, %cst_8 {dimension_numbers = #tpu.dot_dimension_numbers<[1], [0], [0], [1], [0, 0, 1, 1], [], []>} : vector<8x128xbf16>, vector<128x128xbf16>, vector<8x128xf32> -> vector<8x128xf32>
    %c0_9 = arith.constant 0 : index
    %c0_10 = arith.constant 0 : index
    %11 = vector.load %arg5[%c0_9, %c0_10] : memref<1x128xf32, #tpu.memory_space<vmem>>, vector<1x128xf32>
    %12 = vector.broadcast %11 : vector<1x128xf32> to vector<8x128xf32>
    %13 = arith.addf %10, %12 : vector<8x128xf32>
    %cst_11 = arith.constant 0.000000e+00 : f32
    %14 = vector.broadcast %cst_11 : f32 to vector<8x128xf32>
    %15 = arith.maximumf %13, %14 : vector<8x128xf32>
    %16 = arith.truncf %15 : vector<8x128xf32> to vector<8x128xbf16>
    %c0_12 = arith.constant 0 : index
    %c0_13 = arith.constant 0 : index
    %17 = vector.load %arg6[%c0_12, %c0_13] : memref<128x128xbf16, #tpu.memory_space<vmem>>, vector<128x128xbf16>
    %cst_14 = arith.constant dense<0.000000e+00> : vector<8x128xf32>
    %18 = tpu.matmul %16, %17, %cst_14 {dimension_numbers = #tpu.dot_dimension_numbers<[1], [0], [0], [1], [0, 0, 1, 1], [], []>} : vector<8x128xbf16>, vector<128x128xbf16>, vector<8x128xf32> -> vector<8x128xf32>
    %c0_15 = arith.constant 0 : index
    %c0_16 = arith.constant 0 : index
    %19 = vector.load %arg7[%c0_15, %c0_16] : memref<1x128xf32, #tpu.memory_space<vmem>>, vector<1x128xf32>
    %20 = vector.broadcast %19 : vector<1x128xf32> to vector<8x128xf32>
    %21 = arith.addf %18, %20 : vector<8x128xf32>
    %cst_17 = arith.constant 0.000000e+00 : f32
    %22 = vector.broadcast %cst_17 : f32 to vector<8x128xf32>
    %23 = arith.maximumf %21, %22 : vector<8x128xf32>
    %24 = arith.truncf %23 : vector<8x128xf32> to vector<8x128xbf16>
    %c0_18 = arith.constant 0 : index
    %c0_19 = arith.constant 0 : index
    %25 = vector.load %arg8[%c0_18, %c0_19] : memref<128x128xbf16, #tpu.memory_space<vmem>>, vector<128x128xbf16>
    %cst_20 = arith.constant dense<0.000000e+00> : vector<8x128xf32>
    %26 = tpu.matmul %24, %25, %cst_20 {dimension_numbers = #tpu.dot_dimension_numbers<[1], [0], [0], [1], [0, 0, 1, 1], [], []>} : vector<8x128xbf16>, vector<128x128xbf16>, vector<8x128xf32> -> vector<8x128xf32>
    %c0_21 = arith.constant 0 : index
    %c0_22 = arith.constant 0 : index
    %27 = vector.load %arg9[%c0_21, %c0_22] : memref<1x128xf32, #tpu.memory_space<vmem>>, vector<1x128xf32>
    %28 = vector.broadcast %27 : vector<1x128xf32> to vector<8x128xf32>
    %29 = arith.addf %26, %28 : vector<8x128xf32>
    %c0_23 = arith.constant 0 : index
    %c0_24 = arith.constant 0 : index
    %30 = vector.load %arg10[%c0_23, %c0_24] : memref<8x128xf32, #tpu.memory_space<vmem>>, vector<8x128xf32>
    tpu.vector_store %arg10[%c0_23, %c0_24], %29 {strides = array<i32>} : memref<8x128xf32, #tpu.memory_space<vmem>>, vector<8x128xf32>,
    return
  }
  func.func @transform_0(%arg0: i32) -> (i32, i32) {
    %c0_i32 = arith.constant 0 : i32
    %c0_i32_0 = arith.constant 0 : i32
    return %arg0, %c0_i32 : i32, i32
  }
  func.func @transform_1(%arg0: i32) -> (i32, i32) {
    %c0_i32 = arith.constant 0 : i32
    %c0_i32_0 = arith.constant 0 : i32
    %c0_i32_1 = arith.constant 0 : i32
    return %c0_i32, %c0_i32_0 : i32, i32
  }
  func.func @transform_2(%arg0: i32) -> (i32, i32) {
    %c0_i32 = arith.constant 0 : i32
    %c0_i32_0 = arith.constant 0 : i32
    %c0_i32_1 = arith.constant 0 : i32
    return %c0_i32, %c0_i32_0 : i32, i32
  }
  func.func @transform_3(%arg0: i32) -> (i32, i32) {
    %c0_i32 = arith.constant 0 : i32
    %c0_i32_0 = arith.constant 0 : i32
    %c0_i32_1 = arith.constant 0 : i32
    return %c0_i32, %c0_i32_0 : i32, i32
  }
  func.func @transform_4(%arg0: i32) -> (i32, i32) {
    %c0_i32 = arith.constant 0 : i32
    %c0_i32_0 = arith.constant 0 : i32
    %c0_i32_1 = arith.constant 0 : i32
    return %c0_i32, %c0_i32_0 : i32, i32
  }
  func.func @transform_5(%arg0: i32) -> (i32, i32) {
    %c0_i32 = arith.constant 0 : i32
    %c0_i32_0 = arith.constant 0 : i32
    %c0_i32_1 = arith.constant 0 : i32
    return %c0_i32, %c0_i32_0 : i32, i32
  }
  func.func @transform_6(%arg0: i32) -> (i32, i32) {
    %c0_i32 = arith.constant 0 : i32
    %c0_i32_0 = arith.constant 0 : i32
    %c0_i32_1 = arith.constant 0 : i32
    return %c0_i32, %c0_i32_0 : i32, i32
  }
  func.func @transform_7(%arg0: i32) -> (i32, i32) {
    %c0_i32 = arith.constant 0 : i32
    %c0_i32_0 = arith.constant 0 : i32
    %c0_i32_1 = arith.constant 0 : i32
    return %c0_i32, %c0_i32_0 : i32, i32
  }
  func.func @transform_8(%arg0: i32) -> (i32, i32) {
    %c0_i32 = arith.constant 0 : i32
    %c0_i32_0 = arith.constant 0 : i32
    %c0_i32_1 = arith.constant 0 : i32
    return %c0_i32, %c0_i32_0 : i32, i32
  }
  func.func @transform_9(%arg0: i32) -> (i32, i32) {
    %c0_i32 = arith.constant 0 : i32
    %c0_i32_0 = arith.constant 0 : i32
    return %arg0, %c0_i32 : i32, i32
  }
}

</mosaic_0001>

<bundles_post_ra>
// kernel: tpu_custom_call.1
= control target key start
LH: loop header
LB: loop body
LE: loop exit
PB: predicated region body
PF: predicated region fallthrough
CT: control target
= control target key end

     0   :  { %14 = vsyncpa [#allocation3], 0  ;;  %s800_s0 = inlined_call_operand.hbm [shape: bf16[8,32], index: 0, kind: input, shape index: {}]   ;;  %s801_s1 = inlined_call_operand.hbm [shape: bf16[32,128], index: 1, kind: input, shape index: {}]   ;;  %s802_s2 = inlined_call_operand.vmem [shape: f32[1,128], index: 2, kind: input, shape index: {}]   ;;  %s803_s3 = inlined_call_operand.hbm [shape: bf16[128,128], index: 3, kind: input, shape index: {}]   ;;  %s804_s4 = inlined_call_operand.vmem [shape: f32[1,128], index: 4, kind: input, shape index: {}]   ;;  %s805_s5 = inlined_call_operand.hbm [shape: bf16[128,128], index: 5, kind: input, shape index: {}]   ;;  %s806_s6 = inlined_call_operand.vmem [shape: f32[1,128], index: 6, kind: input, shape index: {}]   ;;  %s807_s7 = inlined_call_operand.hbm [shape: bf16[128,128], index: 7, kind: input, shape index: {}]   ;;  %s808_s8 = inlined_call_operand.vmem [shape: f32[1,128], index: 8, kind: input, shape index: {}]   ;;  %s809_s9 = inlined_call_operand.hbm [shape: f32[8,128], index: 9, kind: output, shape index: {}]  }
   0x1   :  { %15 = vsyncpa [#allocation6], 0 }
   0x2   :  { %16 = vsyncpa [#allocation9], 0  ;;  %s33_s11 = sshll.u32 %s801_s1, 4  ;;  %s34_s11 = int_to_ptr.hbm [resolvable:$true] %s33_s11 }
   0x3   :  { %17 = vsyncpa [#allocation4], 0  ;;  %s712_s12 = smov [#allocation5]   ;;  %s63_s16 = sshll.u32 %s805_s5, 4  ;;  %s64_s16 = int_to_ptr.hbm [resolvable:$true] %s63_s16 }
   0x4   :  { %s35_s13 = sshll.u32 %s712_s12, 4  ;;  %s713_s17 = smov 64   ;;  %s36_s13 = int_to_ptr.vmem [resolvable:$true] %s35_s13 }
   0x5   :  { %s714_s18 = smov 4   ;;  %s715_s19 = smov [#allocation8]  }
   0x6   :  { %41 = dma.hbm_to_vmem [thread:$0]  %s34_s11, 256, %s36_s13, [#allocation6], %s713_s17, %s713_s17, %s714_s18  }
   0x7   :  { %s65_s20 = sshll.u32 %s715_s19, 4  ;;  %s23_s23 = sshll.u32 %s800_s0, 4  ;;  %s66_s20 = int_to_ptr.vmem [resolvable:$true] %s65_s20  ;;  %s24_s23 = int_to_ptr.hbm [resolvable:$true] %s23_s23 }
   0x8   :  { %71 = dma.hbm_to_vmem [thread:$0]  %s64_s16, 1024, %s66_s20, [#allocation9], %s713_s17, %s713_s17, %s714_s18  }
   0x9   :  { %s48_s25 = sshll.u32 %s803_s3, 4  ;;  %s716_s26 = smov [#allocation2]   ;;  %s49_s25 = int_to_ptr.hbm [resolvable:$true] %s48_s25 }
   0xa   :  { %s25_s27 = sshll.u32 %s716_s26, 4  ;;  %s717_s5 = smov [#allocation7]   ;;  %s26_s27 = int_to_ptr.vmem [resolvable:$true] %s25_s27 }
   0xb   :  { %28 = dma.hbm_to_vmem [thread:$0]  %s24_s23, 64, %s26_s27, [#allocation3]  }
   0xc   :  { %s50_s28 = sshll.u32 %s717_s5, 4  ;;  %s78_s10 = sshll.u32 %s807_s7, 4  ;;  %s51_s28 = int_to_ptr.vmem [resolvable:$true] %s50_s28  ;;  %s79_s10 = int_to_ptr.hbm [resolvable:$true] %s78_s10 }
   0xd   :  { %56 = dma.hbm_to_vmem [thread:$0]  %s49_s25, 1024, %s51_s28, [#allocation6], %s713_s17, %s713_s17, %s714_s18  }
   0xe   :  { %s718_s0 = smov [#allocation10]  }
   0xf   :  { %s80_s11 = sshll.u32 %s718_s0, 4  ;;  %s81_s11 = int_to_ptr.vmem [resolvable:$true] %s80_s11 }
  0x10   :  { %86 = dma.hbm_to_vmem [thread:$0]  %s79_s10, 1024, %s81_s11, [#allocation9], %s713_s17, %s713_s17, %s714_s18  }
  0x11   :  { %704 = dma.done.wait [#allocation3], 64  }
  0x12   :  { %705 = vsyncadd [#allocation3], 4294967232 }
  0x13   :  { %706 = dma.done.wait [#allocation6], 1280  }
  0x14   :  { %707 = vsyncadd [#allocation6], 4294966016 }
  0x15   :  { %708 = dma.done.wait [#allocation9], 2048  }
  0x16   :  { %709 = vsyncadd [#allocation9], 4294965248  ;;  %v523_v0 = vld [vmem:[#allocation5 + $0x8] sm:$0xff]  ;;  %v522_v2 = vld [vmem:[#allocation5] sm:$0xff]  ;;  %vm131_vm0 = vcmask 261120   ;;  %s719_s16 = smov [#allocation11]  }
  0x17   :  { %v531_v1 = vld [vmem:[#allocation7 + $0x38] sm:$0xff]  ;;  %141 = vmatpush.bf16.msra.mxu0 %v523_v0  ;;  %v530_v3 = vld [vmem:[#allocation7 + $0x30] sm:$0xff]  ;;  %v110_v4 = vld [vmem:[#allocation2] sm:$0xf]  ;;  %s403_s17 = sshll.u32 %s719_s16, 4  ;;  %s405_s20 = sshll.u32 %s809_s9, 4  ;;  %s404_s17 = int_to_ptr.vmem [resolvable:$true] %s403_s17  ;;  %s406_s20 = int_to_ptr.hbm [resolvable:$true] %s405_s20 }
  0x18   :  { %218 = vmatpush.bf16.msra.mxu1 %v531_v1  ;;  %v529_v5 = vld [vmem:[#allocation7 + $0x28] sm:$0xff]  ;;  %v528_v6 = vld [vmem:[#allocation7 + $0x20] sm:$0xff]  ;;  %v527_v7 = vld [vmem:[#allocation7 + $0x18] sm:$0xff] }
  0x19   :  { %v526_v8 = vld [vmem:[#allocation7 + $0x10] sm:$0xff]  ;;  %v525_v9 = vld [vmem:[#allocation7 + $0x8] sm:$0xff]  ;;  %v524_v10 = vld [vmem:[#allocation7] sm:$0xff] }
  0x1a   :  { %v539_v11 = vld [vmem:[#allocation8 + $0x38] sm:$0xff]  ;;  %v538_v12 = vld [vmem:[#allocation8 + $0x30] sm:$0xff]  ;;  %v537_v13 = vld [vmem:[#allocation8 + $0x28] sm:$0xff] }
  0x1b   :  { %142 = vmatpush.bf16.msra.mxu0 %v522_v2  ;;  %301 = vmatpush.bf16.msra.mxu2 %v539_v11  ;;  %v536_v14 = vld [vmem:[#allocation8 + $0x20] sm:$0xff]  ;;  %v535_v15 = vld [vmem:[#allocation8 + $0x18] sm:$0xff]  ;;  %v534_v16 = vld [vmem:[#allocation8 + $0x10] sm:$0xff] }
  0x1c   :  { %219 = vmatpush.bf16.msra.mxu1 %v530_v3  ;;  %v556_v17 = vld [vmem:[%s802_s2] ss:$0 sm:$0xff]  ;;  %v532_v24 = vld [vmem:[#allocation8] sm:$0xff]  ;;  %v547_v25 = vld [vmem:[#allocation10 + $0x38] sm:$0xff] }
  0x1d   :  { %v533_v23 = vld [vmem:[#allocation8 + $0x8] sm:$0xff]  ;;  %384 = vmatpush.bf16.msra.mxu3 %v547_v25  ;;  %v546_v26 = vld [vmem:[#allocation10 + $0x30] sm:$0xff]  ;;  %v544_v28 = vld [vmem:[#allocation10 + $0x20] sm:$0xff] }
  0x1e   :  { %425 = vmatmul.msk.bf16.vlgmr.msra.gmra.mxu0 %vm131_vm0, %v110_v4  ;;  %v545_v27 = vld [vmem:[#allocation10 + $0x28] sm:$0xff]  ;;  %v543_v29 = vld [vmem:[#allocation10 + $0x18] sm:$0xff]  ;;  %v542_v30 = vld [vmem:[#allocation10 + $0x10] sm:$0xff] }
  0x1f   :  { %302 = vmatpush.bf16.msra.mxu2 %v538_v12  ;;  %v557_v31 = vld [vmem:[%s804_s4] ss:$0 sm:$0xff]  ;;  %v540_v38 = vld [vmem:[#allocation10] sm:$0xff] }
  0x20   :  { %220 = vmatpush.bf16.msra.mxu1 %v529_v5  ;;  %v541_v37 = vld [vmem:[#allocation10 + $0x8] sm:$0xff] }
  0x21   :  { %385 = vmatpush.bf16.msra.mxu3 %v546_v26  ;;  %v558_v39 = vld [vmem:[%s806_s6] ss:$0 sm:$0xff] }
  0x22   :  { %v559_v45 = vld [vmem:[%s808_s8] ss:$0 sm:$0xff] }
  0x23   :  { %303 = vmatpush.bf16.msra.mxu2 %v537_v13 }
  0x24   :  { %221 = vmatpush.bf16.msra.mxu1 %v528_v6 }
  0x25   :  { %386 = vmatpush.bf16.msra.mxu3 %v545_v27 }
  0x27   :  { %304 = vmatpush.bf16.msra.mxu2 %v536_v14 }
  0x28   :  { %222 = vmatpush.bf16.msra.mxu1 %v527_v7 }
  0x29   :  { %387 = vmatpush.bf16.msra.mxu3 %v544_v28 }
  0x2b   :  { %305 = vmatpush.bf16.msra.mxu2 %v535_v15 }
  0x2c   :  { %223 = vmatpush.bf16.msra.mxu1 %v526_v8 }
  0x2d   :  { %388 = vmatpush.bf16.msra.mxu3 %v543_v29 }
  0x2f   :  { %306 = vmatpush.bf16.msra.mxu2 %v534_v16 }
  0x30   :  { %224 = vmatpush.bf16.msra.mxu1 %v525_v9 }
  0x31   :  { %389 = vmatpush.bf16.msra.mxu3 %v542_v30 }
  0x33   :  { %307 = vmatpush.bf16.msra.mxu2 %v533_v23 }
  0x34   :  { %225 = vmatpush.bf16.msra.mxu1 %v524_v10 }
  0x35   :  { %390 = vmatpush.bf16.msra.mxu3 %v541_v37 }
  0x37   :  { %308 = vmatpush.bf16.msra.mxu2 %v532_v24 }
  0x39   :  { %391 = vmatpush.bf16.msra.mxu3 %v540_v38 }
  0x9b   :  { %v144_v18 = vpop.f32.mrf.mxu0 }
  0x9c   :  { %v145_v19 = vadd.f32 %v556_v17, %v144_v18 }
  0x9e   :  { %v148_v20 = vmax.f32 %v145_v19, 0.0 }
  0xa0   :  { %v149_v21 = vpack.c.bf16 %v148_v20, %v148_v20 }
  0xa2   :  { %226 = vmatmul.bf16.vlgmr.msra.gmra.mxu1 %v149_v21 }
  0xa3   :  { %v146_v22 = vpop.f32.mrf.mxu0 }
 0x11f   :  { %v227_v32 = vpop.f32.mrf.mxu1 }
 0x120   :  { %v228_v33 = vadd.f32 %v557_v31, %v227_v32 }
 0x122   :  { %v231_v34 = vmax.f32 %v228_v33, 0.0 }
 0x124   :  { %v232_v35 = vpack.c.bf16 %v231_v34, %v231_v34 }
 0x126   :  { %309 = vmatmul.bf16.vlgmr.msra.gmra.mxu2 %v232_v35 }
 0x127   :  { %v229_v36 = vpop.f32.mrf.mxu1 }
 0x1a9   :  { %v310_v40 = vpop.f32.mrf.mxu2 }
 0x1aa   :  { %v311_v41 = vadd.f32 %v558_v39, %v310_v40 }
 0x1ac   :  { %v314_v42 = vmax.f32 %v311_v41, 0.0 }
 0x1ae   :  { %v315_v43 = vpack.c.bf16 %v314_v42, %v314_v42 }
 0x1b0   :  { %392 = vmatmul.bf16.vlgmr.msra.gmra.mxu3 %v315_v43 }
 0x1b1   :  { %v312_v44 = vpop.f32.mrf.mxu2 }
 0x233   :  { %v393_v46 = vpop.f32.mrf.mxu3 }
 0x234   :  { %v394_v47 = vadd.f32 %v559_v45, %v393_v46 }
 0x236   :  { %397 = vst [vmem:[#allocation11] sm:$0xff] %v394_v47 }
 0x237   :  { %408 = dma.vmem_to_hbm [thread:$0]  %s404_s17, 128, %s406_s20, [#allocation4]  }
 0x23b   :  { %v395_v48 = vpop.f32.mrf.mxu3 }
 0x23c   :  { %710 = dma.done.wait [#allocation4], 128  }
 0x23d   :  { %711 = vsyncadd [#allocation4], 4294967168 }
 0x23e   :  { %413 = vsyncpa [#allocation3], 1 }
 0x23f   :  { %414 = vsyncpa [#allocation6], 1 }
 0x240   :  { %415 = vsyncpa [#allocation9], 1 }
 0x241   :  { %416 = vsyncpa [#allocation4], 1 }

</bundles_post_ra>
